<compile_context>
chip_gen: v6e
topology: v6e:2x2x1
jax: 0.10.0
libtpu: 0.0.40
codegen_flags: <defaults>
</compile_context>

<pallas_src>
import functools

import jax
import jax.numpy as jnp
from jax.experimental import pallas as pl
from jax.experimental.pallas import tpu as pltpu


def _policy_mlp_kernel(x_ref, w1_ref, b1_ref, w2_ref, b2_ref, o_ref):
    # x: (TB, S) f32 — cast to bf16 only for the MXU operand (in-kernel, so the
    # f32 state bytes are read from HBM exactly once, no wrapper cast pass).
    x = x_ref[...].astype(w1_ref.dtype)

    # Hidden layer: bf16 MXU matmul, f32 accumulation; elementwise stays f32.
    h = jnp.dot(x, w1_ref[...], preferred_element_type=jnp.float32)
    h = jnp.maximum(h + b1_ref[...], 0.0)          # hidden_activation = relu (f32 VPU)

    # Output layer: cast activations to bf16 only for the MXU operand.
    out = jnp.dot(h.astype(w2_ref.dtype), w2_ref[...],
                  preferred_element_type=jnp.float32)
    out = jnp.tanh(out + b2_ref[...])              # output_activation = tanh (f32 EUP)
    o_ref[...] = out.astype(o_ref.dtype)


def _round_up(x: int, m: int) -> int:
    return (x + m - 1) // m * m


def _choose_batch_tile(batch: int, block_b: int) -> int:
    tb = min(block_b, _round_up(batch, 8))
    # Guarantee >= 2 grid steps when the batch allows it so that the
    # "parallel" batch axis feeds both v7x TensorCores.
    if pl.cdiv(batch, tb) < 2 and batch > 8:
        tb = _round_up(pl.cdiv(batch, 2), 8)
    return tb


def prepare_params(w1, b1, w2, b2, matmul_dtype=jnp.bfloat16):
    """One-time parameter prep (hoisted out of the per-call path):
    pad the hidden dim to a multiple of 128 lanes and cast weights to the
    MXU dtype; biases stay f32.  Zero-padding contributes exactly 0 through
    matmul + relu, so results are unchanged."""
    H = w1.shape[1]
    H_pad = _round_up(H, 128)
    if H_pad != H:
        w1 = jnp.pad(w1, ((0, 0), (0, H_pad - H)))
        b1 = jnp.pad(b1, ((0, 0), (0, H_pad - H)))
        w2 = jnp.pad(w2, ((0, H_pad - H), (0, 0)))
    return (w1.astype(matmul_dtype), b1.astype(jnp.float32),
            w2.astype(matmul_dtype), b2.astype(jnp.float32))


@functools.partial(jax.jit, static_argnames=("block_b",))
def policy_network_forward(state, w1, b1, w2, b2, *, block_b: int = 1024):
    """state: (B, S) f32; w1: (S, Hp) bf16; b1: (1, Hp) f32; w2: (Hp, O) bf16; b2: (1, O) f32."""
    B, S = state.shape
    H = w1.shape[1]          # already 128-padded by prepare_params
    O = w2.shape[1]

    TB = _choose_batch_tile(B, block_b)
    grid = (pl.cdiv(B, TB),)

    return pl.pallas_call(
        _policy_mlp_kernel,
        out_shape=jax.ShapeDtypeStruct((B, O), jnp.float32),
        grid_spec=pltpu.PrefetchScalarGridSpec(
            num_scalar_prefetch=0,
            grid=grid,
            in_specs=[
                # State tile moves with the batch grid step.  Lane dim == real
                # S (block dim equals the full array dim, so no 128 padding).
                pl.BlockSpec((TB, S), lambda i: (i, 0)),
                # Weights / biases: constant block index -> resident in VMEM.
                pl.BlockSpec((S, H), lambda i: (0, 0)),
                pl.BlockSpec((1, H), lambda i: (0, 0)),
                pl.BlockSpec((H, O), lambda i: (0, 0)),
                pl.BlockSpec((1, O), lambda i: (0, 0)),
            ],
            # Real output shape (B, O): tiny masked store, no padded writeback
            # and no follow-up slice kernel.  Ragged last batch block is masked.
            out_specs=pl.BlockSpec((TB, O), lambda i: (i, 0)),
        ),
        compiler_params=pltpu.CompilerParams(
            dimension_semantics=("parallel",)),
    )(state, w1, b1, w2, b2)


if __name__ == "__main__":
    key = jax.random.PRNGKey(0)
    batch, state_dim, hidden_size, action_dim = 8, 16, 32, 4

    k_x, k_w1, k_b1, k_w2, k_b2, k_x2 = jax.random.split(key, 6)
    state = jax.random.normal(k_x, (batch, state_dim), dtype=jnp.float32)
    # Deterministic parameter init (synthetic, not a checkpoint load).
    w1 = jax.random.normal(k_w1, (state_dim, hidden_size), dtype=jnp.float32) * 0.1
    b1 = jax.random.normal(k_b1, (1, hidden_size), dtype=jnp.float32) * 0.01
    w2 = jax.random.normal(k_w2, (hidden_size, action_dim), dtype=jnp.float32) * 0.1
    b2 = jax.random.normal(k_b2, (1, action_dim), dtype=jnp.float32) * 0.01

    # One-time weight prep (pad hidden dim to 128, cast to bf16), hoisted out
    # of the per-call path.
    w1_p, b1_p, w2_p, b2_p = prepare_params(w1, b1, w2, b2)

    def ref_fwd(x):
        # Plain-JAX reference mirroring the kernel's bf16-matmul / f32-elementwise scheme.
        xb = x.astype(jnp.bfloat16)
        h = jnp.maximum(
            jnp.dot(xb, w1_p, preferred_element_type=jnp.float32) + b1_p, 0.0)
        o = jnp.dot(h.astype(jnp.bfloat16), w2_p,
                    preferred_element_type=jnp.float32) + b2_p
        return jnp.tanh(o)

    # Small single-tile case.
    out = jax.block_until_ready(
        policy_network_forward(state, w1_p, b1_p, w2_p, b2_p))
    assert out.shape == (batch, action_dim)
    assert jnp.allclose(out, ref_fwd(state), atol=1e-3, rtol=1e-3)

    # Ragged multi-step grid case: B=260 is not a multiple of the batch tile;
    # exercises grid=(2,) with a masked final block and the v7x 2-TC split.
    batch2 = 260
    state2 = jax.random.normal(k_x2, (batch2, state_dim), dtype=jnp.float32)
    out2 = jax.block_until_ready(
        policy_network_forward(state2, w1_p, b1_p, w2_p, b2_p))
    assert out2.shape == (batch2, action_dim)
    assert jnp.allclose(out2, ref_fwd(state2), atol=1e-3, rtol=1e-3)

    print("KERNEL_OK")
</pallas_src>

<mosaic_0001>
module attributes {stable_mosaic.version = 11 : i64} {
  func.func @_policy_mlp_kernel(%arg0: i32, %arg1: memref<8x16xf32, #tpu.memory_space<vmem>>, %arg2: memref<16x128xbf16, #tpu.memory_space<vmem>>, %arg3: memref<1x128xf32, #tpu.memory_space<vmem>>, %arg4: memref<128x4xbf16, #tpu.memory_space<vmem>>, %arg5: memref<1x4xf32, #tpu.memory_space<vmem>>, %arg6: memref<8x4xf32, #tpu.memory_space<vmem>>) attributes {dimension_semantics = [#tpu.dimension_semantics<parallel>], iteration_bounds = array<i64: 1>, scalar_prefetch = 0 : i64, scratch_operands = 0 : i64, tpu.core_type = #tpu.core_type<tc>, window_params = [{transform_indices = @transform_0, window_bounds = array<i64: 8, 16>}, {pipeline_mode = #tpu.pipeline_mode<synchronous>, transform_indices = @transform_1, window_bounds = array<i64: 16, 128>}, {pipeline_mode = #tpu.pipeline_mode<synchronous>, transform_indices = @transform_2, window_bounds = array<i64: 1, 128>}, {pipeline_mode = #tpu.pipeline_mode<synchronous>, transform_indices = @transform_3, window_bounds = array<i64: 128, 4>}, {pipeline_mode = #tpu.pipeline_mode<synchronous>, transform_indices = @transform_4, window_bounds = array<i64: 1, 4>}, {transform_indices = @transform_5, window_bounds = array<i64: 8, 4>}]} {
    %c0 = arith.constant 0 : index
    %c0_0 = arith.constant 0 : index
    %0 = vector.load %arg1[%c0, %c0_0] : memref<8x16xf32, #tpu.memory_space<vmem>>, vector<8x16xf32>
    %1 = arith.truncf %0 : vector<8x16xf32> to vector<8x16xbf16>
    %c0_1 = arith.constant 0 : index
    %c0_2 = arith.constant 0 : index
    %2 = vector.load %arg2[%c0_1, %c0_2] : memref<16x128xbf16, #tpu.memory_space<vmem>>, vector<16x128xbf16>
    %cst = arith.constant dense<0.000000e+00> : vector<8x128xf32>
    %3 = tpu.matmul %1, %2, %cst {dimension_numbers = #tpu.dot_dimension_numbers<[1], [0], [0], [1], [0, 0, 1, 1], [], []>} : vector<8x16xbf16>, vector<16x128xbf16>, vector<8x128xf32> -> vector<8x128xf32>
    %c0_3 = arith.constant 0 : index
    %c0_4 = arith.constant 0 : index
    %4 = vector.load %arg3[%c0_3, %c0_4] : memref<1x128xf32, #tpu.memory_space<vmem>>, vector<1x128xf32>
    %5 = vector.broadcast %4 : vector<1x128xf32> to vector<8x128xf32>
    %6 = arith.addf %3, %5 : vector<8x128xf32>
    %cst_5 = arith.constant 0.000000e+00 : f32
    %7 = vector.broadcast %cst_5 : f32 to vector<8x128xf32>
    %8 = arith.maximumf %6, %7 : vector<8x128xf32>
    %9 = arith.truncf %8 : vector<8x128xf32> to vector<8x128xbf16>
    %c0_6 = arith.constant 0 : index
    %c0_7 = arith.constant 0 : index
    %10 = vector.load %arg4[%c0_6, %c0_7] : memref<128x4xbf16, #tpu.memory_space<vmem>>, vector<128x4xbf16>
    %cst_8 = arith.constant dense<0.000000e+00> : vector<8x4xf32>
    %11 = tpu.matmul %9, %10, %cst_8 {dimension_numbers = #tpu.dot_dimension_numbers<[1], [0], [0], [1], [0, 0, 1, 1], [], []>} : vector<8x128xbf16>, vector<128x4xbf16>, vector<8x4xf32> -> vector<8x4xf32>
    %c0_9 = arith.constant 0 : index
    %c0_10 = arith.constant 0 : index
    %12 = vector.load %arg5[%c0_9, %c0_10] : memref<1x4xf32, #tpu.memory_space<vmem>>, vector<1x4xf32>
    %13 = vector.broadcast %12 : vector<1x4xf32> to vector<8x4xf32>
    %14 = arith.addf %11, %13 : vector<8x4xf32>
    %15 = math.tanh %14 : vector<8x4xf32>
    %c0_11 = arith.constant 0 : index
    %c0_12 = arith.constant 0 : index
    %16 = vector.load %arg6[%c0_11, %c0_12] : memref<8x4xf32, #tpu.memory_space<vmem>>, vector<8x4xf32>
    tpu.vector_store %arg6[%c0_11, %c0_12], %15 {strides = array<i32>} : memref<8x4xf32, #tpu.memory_space<vmem>>, vector<8x4xf32>,
    return
  }
  func.func @transform_0(%arg0: i32) -> (i32, i32) {
    %c0_i32 = arith.constant 0 : i32
    %c0_i32_0 = arith.constant 0 : i32
    return %arg0, %c0_i32 : i32, i32
  }
  func.func @transform_1(%arg0: i32) -> (i32, i32) {
    %c0_i32 = arith.constant 0 : i32
    %c0_i32_0 = arith.constant 0 : i32
    %c0_i32_1 = arith.constant 0 : i32
    return %c0_i32, %c0_i32_0 : i32, i32
  }
  func.func @transform_2(%arg0: i32) -> (i32, i32) {
    %c0_i32 = arith.constant 0 : i32
    %c0_i32_0 = arith.constant 0 : i32
    %c0_i32_1 = arith.constant 0 : i32
    return %c0_i32, %c0_i32_0 : i32, i32
  }
  func.func @transform_3(%arg0: i32) -> (i32, i32) {
    %c0_i32 = arith.constant 0 : i32
    %c0_i32_0 = arith.constant 0 : i32
    %c0_i32_1 = arith.constant 0 : i32
    return %c0_i32, %c0_i32_0 : i32, i32
  }
  func.func @transform_4(%arg0: i32) -> (i32, i32) {
    %c0_i32 = arith.constant 0 : i32
    %c0_i32_0 = arith.constant 0 : i32
    %c0_i32_1 = arith.constant 0 : i32
    return %c0_i32, %c0_i32_0 : i32, i32
  }
  func.func @transform_5(%arg0: i32) -> (i32, i32) {
    %c0_i32 = arith.constant 0 : i32
    %c0_i32_0 = arith.constant 0 : i32
    return %arg0, %c0_i32 : i32, i32
  }
}

</mosaic_0001>

<bundles_post_ra>
// kernel: policy_network_forward.1
= control target key start
LH: loop header
LB: loop body
LE: loop exit
PB: predicated region body
PF: predicated region fallthrough
CT: control target
= control target key end

     0   :  { %v264_v0 = vmov 0.0   ;;  %vm265_vm0 = vmmov 0   ;;  %vm38_vm1 = vcmask 130048   ;;  %vm196_vm2 = vcmask 31744   ;;  %s335_s1 = inlined_call_operand.vmem [shape: bf16[16,128], index: 1, kind: input, shape index: {}]   ;;  %s336_s0 = inlined_call_operand.vmem [shape: f32[8,16], index: 0, kind: input, shape index: {}]   ;;  %s337_s3 = inlined_call_operand.vmem [shape: bf16[128,4], index: 3, kind: input, shape index: {}]   ;;  %s338_s2 = inlined_call_operand.vmem [shape: f32[1,128], index: 2, kind: input, shape index: {}]   ;;  %s339_s4 = inlined_call_operand.vmem [shape: f32[1,4], index: 4, kind: input, shape index: {}]   ;;  %s340_s5 = inlined_call_operand.vmem [shape: f32[8,4], index: 5, kind: output, shape index: {}]  }
   0x1   :  { %225 = vmatprep.subr.bf16.mxu0 %v264_v0  ;;  %v253_v1 = vld [vmem:[%s335_s1] sm:$0xff]   ;;  %227 = vmatprep.mubr.msk.bf16.mxu0 %vm265_vm0, %v264_v0  ;;  %v254_v4 = vld [vmem:[%s337_s3 + $0x38] sm:$0xff]   ;;  %v255_v5 = vld [vmem:[%s337_s3 + $0x30] sm:$0xff]  }
   0x2   :  { %v21_v2 = vld [vmem:[%s336_s0] sm:$0xff]  ;;  %231 = vmatprep.subr.bf16.mxu1 %v264_v0  ;;  %247 = vmatprep.mubr.msk.bf16.mxu1 %vm265_vm0, %v264_v0  ;;  %v256_v6 = vld [vmem:[%s337_s3 + $0x28] sm:$0xff]   ;;  %v258_v8 = vld [vmem:[%s337_s3 + $0x18] sm:$0xff]  }
   0x3   :  { %226 = vmatpush3.bf16.msra.mxu0 %v253_v1  ;;  %v22_v3 = vpack.c.bf16 %v21_v2, %v21_v2  ;;  %232 = vmatpush3.bf16.msra.mxu1 %v254_v4  ;;  %v257_v7 = vld [vmem:[%s337_s3 + $0x20] sm:$0xff]   ;;  %v259_v9 = vld [vmem:[%s337_s3 + $0x10] sm:$0xff]   ;;  %v260_v10 = vld [vmem:[%s337_s3 + $0x8] sm:$0xff]  }
   0x4   :  { %233 = vmatprep.subr.bf16.mxu1 %v264_v0  ;;  %v261_v11 = vld [vmem:[%s337_s3] sm:$0xff]  }
   0x5   :  { %v202_v12 = vld [vmem:[%s338_s2] ss:$0 sm:$0xff] }
   0x6   :  { %228 = vmatmul.mubr.msk.bf16.vlgmr.msra.gmra.mxu0 %vm38_vm1, %v22_v3  ;;  %v205_v20 = vld [vmem:[%s339_s4] ss:$0 sm:$0xff] }
   0x7   :  { %234 = vmatpush3.bf16.msra.mxu1 %v255_v5 }
   0x8   :  { %235 = vmatprep.subr.bf16.mxu1 %v264_v0 }
   0xb   :  { %236 = vmatpush3.bf16.msra.mxu1 %v256_v6 }
   0xc   :  { %237 = vmatprep.subr.bf16.mxu1 %v264_v0 }
   0xf   :  { %238 = vmatpush3.bf16.msra.mxu1 %v257_v7 }
  0x10   :  { %239 = vmatprep.subr.bf16.mxu1 %v264_v0 }
  0x13   :  { %240 = vmatpush3.bf16.msra.mxu1 %v258_v8 }
  0x14   :  { %241 = vmatprep.subr.bf16.mxu1 %v264_v0 }
  0x17   :  { %242 = vmatpush3.bf16.msra.mxu1 %v259_v9 }
  0x18   :  { %243 = vmatprep.subr.bf16.mxu1 %v264_v0 }
  0x1b   :  { %244 = vmatpush3.bf16.msra.mxu1 %v260_v10 }
  0x1c   :  { %245 = vmatprep.subr.bf16.mxu1 %v264_v0 }
  0x1f   :  { %246 = vmatpush3.bf16.msra.mxu1 %v261_v11 }
  0xc6   :  { %v76_v13 = vpop.f32.mrf.mxu0 }
  0xc7   :  { %v77_v14 = vadd.f32 %v202_v12, %v76_v13 }
  0xc8   :  { %v229_v15 = vpop.f32.mrf.mxu0 }
  0xc9   :  { %v82_v16 = vmax.f32 %v77_v14, 0.0 }
  0xca   :  { %v79_v17 = vpop.f32.mrf.mxu0 }
  0xcb   :  { %v83_v18 = vpack.c.bf16 %v82_v16, %v82_v16 }
  0xcc   :  { %v230_v19 = vpop.f32.mrf.mxu0 }
  0xcd   :  { %248 = vmatmul.mubr.bf16.vlgmr.msra.gmra.mxu1 %v83_v18 }
 0x18d   :  { %v189_v21 = vpop.f32.mrf.mxu1 }
 0x18e   :  { %v190_v22 = vadd.f32 %v205_v20, %v189_v21 }
 0x18f   :  { %v249_v23 = vpop.f32.mrf.mxu1 }
 0x190   :  { %262 = vtanh.f32 %v190_v22 }
 0x191   :  { %v192_v24 = vpop.f32.mrf.mxu1 }
 0x193   :  { %v250_v25 = vpop.f32.mrf.mxu1 }
 0x19d   :  { %v263_v26 = vpop.eup %262 }
 0x19e   :  { %197 = vst.msk [vmem:[%s340_s5] sm:$0xff] %vm196_vm2, %v263_v26 }

</bundles_post_ra>
